<compile_context>
chip_gen: v5e
topology: v5e:2x2
jax: 0.10.0
libtpu: 0.0.40
codegen_flags: <defaults>
</compile_context>

<pallas_src>
import jax
import jax.numpy as jnp
from jax.experimental import pallas as pl
from jax.experimental.pallas import tpu as pltpu


def _conv1x1_kernel(x_ref, w_ref, o_ref):
    # x_ref: (Cin, TM)   spatial on lanes, channels on sublanes
    # w_ref: (Cout, Cin)
    # o_ref: (Cout, TM)  lane-dense output
    o_ref[...] = jnp.dot(
        w_ref[...], x_ref[...], preferred_element_type=jnp.float32
    ).astype(o_ref.dtype)


def _pick_spatial_tile(s, cin, cout, budget_bytes=8 * 1024 * 1024):
    """Largest lane-dense tile (multiple of 128) that divides `s` evenly and
    keeps the double-buffered (input + output) tiles well under the scoped
    VMEM default on every TPU generation. Falls back to the full extent,
    which is always a legal block shape and leaves no remainder."""
    per_pos = 4 * (cin + cout)                      # f32 bytes per spatial pos
    cap = max(128, budget_bytes // (2 * per_pos))   # 2x for double buffering
    for t in (2048, 1024, 512, 256, 128):
        if t <= cap and s % t == 0:
            return t
    return s


def downsample_c(x, weight, stride):
    """Equivalent of DownsampleC.forward.

    x:      (N, Cin, H, W)    float32 (NCHW, matching PyTorch)
    weight: (Cout, Cin, 1, 1) float32 (PyTorch Conv2d weight layout)
    returns (N, Cout, Ho, Wo)
    """
    n, cin, h, w = x.shape
    cout = weight.shape[0]

    # stride-s 1x1 conv == spatial subsample + per-pixel channel mixing.
    # Single strided slice, contiguous reshape, NO transpose.
    xs = x[:, :, ::stride, ::stride]                # (N, Cin, Ho, Wo)
    ho, wo = xs.shape[2], xs.shape[3]
    s = ho * wo
    x_flat = xs.reshape(n, cin, s)                  # (N, Cin, S)  free reshape
    w_mat = weight.reshape(cout, cin)               # (Cout, Cin)

    tm = _pick_spatial_tile(s, cin, cout)
    grid = (n, s // tm)                             # tiles divide S exactly

    out_flat = pl.pallas_call(
        _conv1x1_kernel,
        out_shape=jax.ShapeDtypeStruct((n, cout, s), x.dtype),
        grid=grid,
        in_specs=[
            # batch dim squeezed (None); spatial tile lane-dense on the last dim
            pl.BlockSpec((None, cin, tm), lambda b, m: (b, 0, m)),
            # tiny weight: constant block, fetched once / kept resident
            pl.BlockSpec((cout, cin), lambda b, m: (0, 0)),
        ],
        out_specs=pl.BlockSpec((None, cout, tm), lambda b, m: (b, 0, m)),
        compiler_params=pltpu.CompilerParams(
            dimension_semantics=("parallel", "parallel")),
        cost_estimate=pl.CostEstimate(
            flops=2 * n * s * cin * cout,
            transcendentals=0,
            bytes_accessed=4 * (n * s * cin + cin * cout + n * s * cout)),
    )(x_flat, w_mat)

    # (N, Cout, S) is already NCHW-flattened: plain reshape, no transpose.
    return out_flat.reshape(n, cout, ho, wo)


if __name__ == "__main__":
    key = jax.random.PRNGKey(0)
    kx, kw = jax.random.split(key)

    # DownsampleC(nIn=4, nOut=8, stride=2)
    n_in, n_out, stride = 4, 8, 2
    x = jax.random.normal(kx, (2, n_in, 16, 16), dtype=jnp.float32)
    weight = jax.random.normal(kw, (n_out, n_in, 1, 1), dtype=jnp.float32) * 0.1

    fwd = jax.jit(lambda xx, ww: downsample_c(xx, ww, stride))
    out = jax.block_until_ready(fwd(x, weight))

    # reference check against XLA's conv
    ref = jax.lax.conv_general_dilated(
        x, weight, window_strides=(stride, stride), padding="VALID",
        dimension_numbers=("NCHW", "OIHW", "NCHW"),
    )
    assert out.shape == ref.shape == (2, n_out, 8, 8)
    assert jnp.allclose(out, ref, atol=1e-5, rtol=1e-5)

    print("KERNEL_OK")
</pallas_src>

<mosaic_0001>
module attributes {stable_mosaic.version = 11 : i64} {
  func.func @_conv1x1_kernel(%arg0: i32, %arg1: i32, %arg2: memref<1x4x64xf32, #tpu.memory_space<vmem>>, %arg3: memref<8x4xf32, #tpu.memory_space<vmem>>, %arg4: memref<1x8x64xf32, #tpu.memory_space<vmem>>) attributes {dimension_semantics = [#tpu.dimension_semantics<parallel>, #tpu.dimension_semantics<parallel>], iteration_bounds = array<i64: 2, 1>, scalar_prefetch = 0 : i64, scratch_operands = 0 : i64, tpu.core_type = #tpu.core_type<tc>, window_params = [{transform_indices = @transform_0, window_bounds = array<i64: 1, 4, 64>}, {pipeline_mode = #tpu.pipeline_mode<synchronous>, transform_indices = @transform_1, window_bounds = array<i64: 8, 4>}, {transform_indices = @transform_2, window_bounds = array<i64: 1, 8, 64>}]} {
    %c0 = arith.constant 0 : index
    %c0_0 = arith.constant 0 : index
    %0 = vector.load %arg3[%c0, %c0_0] : memref<8x4xf32, #tpu.memory_space<vmem>>, vector<8x4xf32>
    %c0_1 = arith.constant 0 : index
    %c0_2 = arith.constant 0 : index
    %c0_3 = arith.constant 0 : index
    %1 = vector.load %arg2[%c0_1, %c0_2, %c0_3] : memref<1x4x64xf32, #tpu.memory_space<vmem>>, vector<1x4x64xf32>
    %2 = vector.shape_cast %1 : vector<1x4x64xf32> to vector<4x64xf32>
    %cst = arith.constant dense<0.000000e+00> : vector<8x64xf32>
    %3 = tpu.matmul %0, %2, %cst {dimension_numbers = #tpu.dot_dimension_numbers<[1], [0], [0], [1], [0, 0, 1, 1], [], []>} : vector<8x4xf32>, vector<4x64xf32>, vector<8x64xf32> -> vector<8x64xf32>
    %c0_4 = arith.constant 0 : index
    %c0_5 = arith.constant 0 : index
    %c0_6 = arith.constant 0 : index
    %4 = vector.load %arg4[%c0_4, %c0_5, %c0_6] : memref<1x8x64xf32, #tpu.memory_space<vmem>>, vector<1x8x64xf32>
    %5 = vector.shape_cast %4 : vector<1x8x64xf32> to vector<8x64xf32>
    %6 = vector.shape_cast %3 : vector<8x64xf32> to vector<1x8x64xf32>
    tpu.vector_store %arg4[%c0_4, %c0_5, %c0_6], %6 {strides = array<i32>} : memref<1x8x64xf32, #tpu.memory_space<vmem>>, vector<1x8x64xf32>,
    return
  }
  func.func @transform_0(%arg0: i32, %arg1: i32) -> (i32, i32, i32) {
    %c0_i32 = arith.constant 0 : i32
    %c0_i32_0 = arith.constant 0 : i32
    return %arg0, %c0_i32, %arg1 : i32, i32, i32
  }
  func.func @transform_1(%arg0: i32, %arg1: i32) -> (i32, i32) {
    %c0_i32 = arith.constant 0 : i32
    %c0_i32_0 = arith.constant 0 : i32
    %c0_i32_1 = arith.constant 0 : i32
    return %c0_i32, %c0_i32_0 : i32, i32
  }
  func.func @transform_2(%arg0: i32, %arg1: i32) -> (i32, i32, i32) {
    %c0_i32 = arith.constant 0 : i32
    %c0_i32_0 = arith.constant 0 : i32
    return %arg0, %c0_i32, %arg1 : i32, i32, i32
  }
}

</mosaic_0001>

<bundles_post_ra>
// kernel: _lambda_.1
= control target key start
LH: loop header
LB: loop body
LE: loop exit
PB: predicated region body
PF: predicated region fallthrough
CT: control target
= control target key end

     0   :  { %s350_s9 = smov 0   ;;  %s352_s10 = smov 0   ;;  %s374_s0 = inlined_call_operand.vmem [shape: f32[2,4,64], index: 0, kind: input, shape index: {}]   ;;  %s375_s1 = inlined_call_operand.vmem [shape: f32[8,4], index: 1, kind: input, shape index: {}]   ;;  %s376_s2 = inlined_call_operand.vmem [shape: f32[2,8,64], index: 2, kind: output, shape index: {}]  }
   0x1   :  { %s354_s11 = smov 0  }
   0x2 LB: > { %s24_s12 = sadd.s32 1, %s329_s10  ;;  %p280_p0 = scmp.ge.s32.totalorder %s333_s11, 1  ;;  %s333_s11 = sphi %s354_s11, %s12_s11   ;;  %s329_s10 = sphi %s352_s10, %s378_s10   ;;  %s325_s9 = sphi %s350_s9, %s377_s9  }
   0x3   : > { %p26_p1 = scmp.ge.s32.totalorder %s24_s12, 2  ;;  %p130_p2 = scmp.lt.s32.totalorder %s333_s11, 3 }
   0x5   : > { %s380_s12 = smov (%p26_p1, %s24_s12), 0  ;;  %p131_p3 = pnand %p280_p0, %p130_p2 }
   0x6   : > { %p156_p4 = scmp.lt.s32.totalorder (!%p131_p3), %s325_s9, 1 }
   0x7   : > { %134 = sbr.rel (%p131_p3) target bundleno = 144 (0x90), region = 28 }
   0xc   : > { %s382_s9 = smov (!%p156_p4, %s325_s9), 1  ;;  %vm176_vm0 = vcmask 1043456   ;;  %v170_v0 = vld [vmem:[%s375_s1] sm:$0xff]  ;;  %vm172_vm1 = vcmask 31744   ;;  %vm200_vm2 = vcmask 523264  }
   0xd   : > { %s281_s13 = sshll.u32 %s382_s9, 2  ;;  %s282_s19 = sshll.u32 %s382_s9, 3 }
   0xe   : > { %s162_s16 = scalar_lea.vmem %s374_s0, %s281_s13  ;;  %s169_s22 = scalar_lea.vmem %s376_s2, %s282_s19 }
   0xf   : > { %v171_v1 = vld [vmem:[%s162_s16] sm:$0xf] }
  0x10   : > { %283 = vmatpush.msk.msra.mxu0 %vm176_vm0, %v171_v1 }
  0x11   : > { %284 = vmatmul.msk.f32.vlgmr.msra.gmra.mxu0 %vm172_vm1, %v170_v0 }
  0x8e   : > { %v197_v2 = vpop.f32.mrf.mxu0 }
  0x8f   : > { %201 = vst.msk [vmem:[%s169_s22] sm:$0xff] %vm200_vm2, %v197_v2 }
  0x90 PF: > { %s12_s11 = sadd.s32 1, %s333_s11   ;;  %s377_s9 = smov %s329_s10 }
  0x91   : > { %p9_p5 = scmp.ge.s32.totalorder %s12_s11, 4   ;;  %s378_s10 = smov %s380_s12 }
  0x93   :  { %11 = sbr.rel (!%p9_p5) target bundleno = 2 (0x2), region = 58 }

</bundles_post_ra>
